<compile_context>
chip_gen: v6e
topology: v6e:2x2x1
jax: 0.10.0
libtpu: 0.0.40
codegen_flags: <defaults>
</compile_context>

<pallas_src>
import functools
from typing import NamedTuple

import jax
import jax.numpy as jnp
from jax.experimental import pallas as pl
from jax.experimental.pallas import tpu as pltpu

_LANE = 128
_NEG = -1e30  # logit padding value -> exp underflows to exactly 0 in f32


def _policy_kernel(x_ref, w1_ref, b1_ref, w2_ref, b2_ref, out_ref):
    # x_ref:   (TM, S)   flattened observations, f32
    # w1_ref:  (S,  Hp)  Linear1 weight, bf16, cols zero-padded
    # b1_ref:  (1,  Hp)  Linear1 bias, f32, zero-padded
    # w2_ref:  (Hp, Ap)  Linear2 weight, bf16, rows/cols zero-padded
    # b2_ref:  (1,  Ap)  Linear2 bias, f32, padded cols = -1e30 (-> prob exactly 0)
    # out_ref: (TM, Ap)  softmax probabilities, f32
    x = x_ref[...]

    # torch.nn.functional.normalize(x, p=2, dim=1, eps=1e-12) per row:
    # x * rsqrt(max(||x||^2, 1e-24)) == x / max(||x||, 1e-12); rsqrt runs on the EUP.
    sumsq = jnp.sum(x * x, axis=-1, keepdims=True)
    xn = x * jax.lax.rsqrt(jnp.maximum(sumsq, 1e-24))

    # Linear1 + ReLU (bf16 MXU operands, f32 accumulate, f32 bias add).
    h = jnp.dot(xn.astype(jnp.bfloat16), w1_ref[...],
                preferred_element_type=jnp.float32) + b1_ref[...]
    h = jnp.maximum(h, 0.0)

    # Linear2 + softmax(dim=1). Padded action columns carry -1e30 bias -> prob 0,
    # and can never be the row max (real logits are finite), so no inf-inf NaNs.
    logits = jnp.dot(h.astype(jnp.bfloat16), w2_ref[...],
                     preferred_element_type=jnp.float32) + b2_ref[...]
    m = jnp.max(logits, axis=-1, keepdims=True)
    e = jnp.exp(logits - m)
    denom = jnp.sum(e, axis=-1, keepdims=True)
    # Exact divide (NOT pl.reciprocal(approx=True)): these probabilities feed
    # sampling / log-prob gradients, so rows must sum to 1 to f32 precision.
    out_ref[...] = e / denom


class PolicyParams(NamedTuple):
    w1: jax.Array  # (S,  Hp) bf16
    b1: jax.Array  # (1,  Hp) f32
    w2: jax.Array  # (Hp, Ap) bf16
    b2: jax.Array  # (1,  Ap) f32


def _pad_axis(a, axis, size, value=0.0):
    pad = size - a.shape[axis]
    if pad <= 0:
        return a
    widths = [(0, 0)] * a.ndim
    widths[axis] = (0, pad)
    return jnp.pad(a, widths, constant_values=value)


def prepare_params(w1, b1, w2, b2):
    """Pad/cast the weights ONCE (outside the rollout loop).

    Hidden and action dims are padded to 128 lanes independently, so w2 is
    (Hp, Ap) rather than max(h, a)^2. Weights go to bf16 for the MXU; biases
    stay f32 and are added after the f32 accumulation.
    """
    s_size, h_size = w1.shape
    a_size = w2.shape[1]
    h_pad = _LANE * pl.cdiv(h_size, _LANE)
    a_pad = _LANE * pl.cdiv(a_size, _LANE)

    w1_p = _pad_axis(w1.astype(jnp.float32), 1, h_pad).astype(jnp.bfloat16)
    w2_p = _pad_axis(_pad_axis(w2.astype(jnp.float32), 0, h_pad), 1, a_pad)
    w2_p = w2_p.astype(jnp.bfloat16)
    b1_p = _pad_axis(jnp.reshape(b1, (1, h_size)).astype(jnp.float32), 1, h_pad)
    b2_p = _pad_axis(jnp.reshape(b2, (1, a_size)).astype(jnp.float32), 1, a_pad, _NEG)
    return PolicyParams(w1_p, b1_p, w2_p, b2_p)


def _choose_tm(batch):
    """Rows per grid step: cover the padded batch in ~2 'parallel' steps (keeps both
    v7x TensorCores busy), multiple of 128, capped at 1024 for very large rollouts."""
    if batch <= 8:
        return 8
    return min(1024, _LANE * pl.cdiv(pl.cdiv(batch, 2), _LANE))


@functools.partial(jax.jit, static_argnames=("a_size", "tm"))
def simple_policy_forward_batched(xb, params, a_size, tm=None):
    """Apply SimplePolicy.forward independently to each of B observations.

    xb: (B, *obs_shape), params: prepare_params(...). Returns (B, a_size) probs (f32).
    """
    B = xb.shape[0]
    s_size, h_pad = params.w1.shape
    a_pad = params.w2.shape[1]
    if tm is None:
        tm = _choose_tm(B)
    b_pad = tm * pl.cdiv(B, tm)

    x2d = jnp.reshape(xb, (B, s_size)).astype(jnp.float32)
    x_p = _pad_axis(x2d, 0, b_pad)  # zero rows are safe (rsqrt clamp) and sliced off

    out = pl.pallas_call(
        _policy_kernel,
        out_shape=jax.ShapeDtypeStruct((b_pad, a_pad), jnp.float32),
        grid_spec=pltpu.PrefetchScalarGridSpec(
            num_scalar_prefetch=0,
            grid=(b_pad // tm,),
            in_specs=[
                pl.BlockSpec((tm, s_size), lambda i: (i, 0)),     # x: streamed per step
                pl.BlockSpec((s_size, h_pad), lambda i: (0, 0)),  # w1: VMEM-resident
                pl.BlockSpec((1, h_pad), lambda i: (0, 0)),       # b1: VMEM-resident
                pl.BlockSpec((h_pad, a_pad), lambda i: (0, 0)),   # w2: VMEM-resident
                pl.BlockSpec((1, a_pad), lambda i: (0, 0)),       # b2: VMEM-resident
            ],
            out_specs=pl.BlockSpec((tm, a_pad), lambda i: (i, 0)),  # lane-dense store
        ),
        compiler_params=pltpu.CompilerParams(
            dimension_semantics=("parallel",)),
    )(x_p, params.w1, params.b1, params.w2, params.b2)

    return out[:B, :a_size]


def simple_policy_forward(x, params, a_size):
    """Exact SimplePolicy.forward for a single observation: returns (1, a_size)."""
    s_size = params.w1.shape[0]
    x1 = jnp.reshape(x, (1, s_size))
    return simple_policy_forward_batched(x1, params, a_size, tm=8)


def init_params(key, s_size, h_size, a_size):
    """Deterministic init mimicking nn.Linear default: U(-1/sqrt(fan_in), 1/sqrt(fan_in))."""
    k1, k2, k3, k4 = jax.random.split(key, 4)
    bound1 = 1.0 / (s_size ** 0.5)
    bound2 = 1.0 / (h_size ** 0.5)
    w1 = jax.random.uniform(k1, (s_size, h_size), jnp.float32, -bound1, bound1)
    b1 = jax.random.uniform(k2, (1, h_size), jnp.float32, -bound1, bound1)
    w2 = jax.random.uniform(k3, (h_size, a_size), jnp.float32, -bound2, bound2)
    b2 = jax.random.uniform(k4, (1, a_size), jnp.float32, -bound2, bound2)
    return w1, b1, w2, b2


if __name__ == "__main__":
    key = jax.random.PRNGKey(0)
    kx, kb, kp = jax.random.split(key, 3)

    # Shapes consistent with the module: observation (2, 4) flattens to s_size=8,
    # hidden=32, actions=4.
    s_size, h_size, a_size = 8, 32, 4
    w1, b1, w2, b2 = init_params(kp, s_size, h_size, a_size)

    # Pad + cast the weights ONCE, outside the forward path.
    params = jax.block_until_ready(prepare_params(w1, b1, w2, b2))

    # Single observation, exactly as SimplePolicy.forward.
    x = jax.random.normal(kx, (2, 4), jnp.float32)
    probs = jax.block_until_ready(simple_policy_forward(x, params, a_size))

    # Batched rollout path: 256 observations in one pallas_call, 2 "parallel" grid
    # steps of TM=128 rows, weights VMEM-resident across the whole grid.
    xb = jax.random.normal(kb, (256, 2, 4), jnp.float32)
    probs_b = jax.block_until_ready(
        simple_policy_forward_batched(xb, params, a_size))

    # Pure-JAX f32 reference of the same math.
    def ref_forward(xr):
        xf = jnp.reshape(xr, (1, -1)).astype(jnp.float32)
        xn = xf / jnp.maximum(jnp.linalg.norm(xf, axis=1, keepdims=True), 1e-12)
        h = jnp.maximum(xn @ w1 + b1, 0.0)
        return jax.nn.softmax(h @ w2 + b2, axis=1)

    ref = ref_forward(x)
    ref_b = jax.vmap(lambda xi: ref_forward(xi)[0])(xb)

    assert probs.shape == (1, a_size)
    assert probs_b.shape == (xb.shape[0], a_size)
    # Exact softmax normalization -> rows sum to 1 to f32 precision.
    assert jnp.allclose(jnp.sum(probs, axis=-1), 1.0, atol=1e-4)
    assert jnp.allclose(jnp.sum(probs_b, axis=-1), 1.0, atol=1e-4)
    # Tolerance covers bf16 MXU operands (weights/activations); accumulation is f32.
    assert jnp.allclose(probs, ref, atol=5e-3)
    assert jnp.allclose(probs_b, ref_b, atol=5e-3)

    print("KERNEL_OK")
</pallas_src>

<mosaic_0001>
module attributes {stable_mosaic.version = 11 : i64} {
  func.func @_policy_kernel(%arg0: i32, %arg1: memref<8x8xf32, #tpu.memory_space<vmem>>, %arg2: memref<8x128xbf16, #tpu.memory_space<vmem>>, %arg3: memref<1x128xf32, #tpu.memory_space<vmem>>, %arg4: memref<128x128xbf16, #tpu.memory_space<vmem>>, %arg5: memref<1x128xf32, #tpu.memory_space<vmem>>, %arg6: memref<8x128xf32, #tpu.memory_space<vmem>>) attributes {dimension_semantics = [#tpu.dimension_semantics<parallel>], iteration_bounds = array<i64: 1>, scalar_prefetch = 0 : i64, scratch_operands = 0 : i64, tpu.core_type = #tpu.core_type<tc>, window_params = [{transform_indices = @transform_0, window_bounds = array<i64: 8, 8>}, {pipeline_mode = #tpu.pipeline_mode<synchronous>, transform_indices = @transform_1, window_bounds = array<i64: 8, 128>}, {pipeline_mode = #tpu.pipeline_mode<synchronous>, transform_indices = @transform_2, window_bounds = array<i64: 1, 128>}, {pipeline_mode = #tpu.pipeline_mode<synchronous>, transform_indices = @transform_3, window_bounds = array<i64: 128, 128>}, {pipeline_mode = #tpu.pipeline_mode<synchronous>, transform_indices = @transform_4, window_bounds = array<i64: 1, 128>}, {transform_indices = @transform_5, window_bounds = array<i64: 8, 128>}]} {
    %c0 = arith.constant 0 : index
    %c0_0 = arith.constant 0 : index
    %0 = vector.load %arg1[%c0, %c0_0] : memref<8x8xf32, #tpu.memory_space<vmem>>, vector<8x8xf32>
    %1 = arith.mulf %0, %0 : vector<8x8xf32>
    %cst = arith.constant dense<0.000000e+00> : vector<8xf32>
    %2 = vector.multi_reduction <add>, %1, %cst [1] : vector<8x8xf32> to vector<8xf32>
    %3 = vector.shape_cast %2 : vector<8xf32> to vector<8x1xf32>
    %cst_1 = arith.constant 1.000000e-24 : f32
    %4 = vector.broadcast %cst_1 : f32 to vector<8x1xf32>
    %5 = arith.maximumf %3, %4 : vector<8x1xf32>
    %6 = math.rsqrt %5 : vector<8x1xf32>
    %7 = vector.broadcast %6 : vector<8x1xf32> to vector<8x8xf32>
    %8 = arith.mulf %0, %7 : vector<8x8xf32>
    %9 = arith.truncf %8 : vector<8x8xf32> to vector<8x8xbf16>
    %c0_2 = arith.constant 0 : index
    %c0_3 = arith.constant 0 : index
    %10 = vector.load %arg2[%c0_2, %c0_3] : memref<8x128xbf16, #tpu.memory_space<vmem>>, vector<8x128xbf16>
    %cst_4 = arith.constant dense<0.000000e+00> : vector<8x128xf32>
    %11 = tpu.matmul %9, %10, %cst_4 {dimension_numbers = #tpu.dot_dimension_numbers<[1], [0], [0], [1], [0, 0, 1, 1], [], []>} : vector<8x8xbf16>, vector<8x128xbf16>, vector<8x128xf32> -> vector<8x128xf32>
    %c0_5 = arith.constant 0 : index
    %c0_6 = arith.constant 0 : index
    %12 = vector.load %arg3[%c0_5, %c0_6] : memref<1x128xf32, #tpu.memory_space<vmem>>, vector<1x128xf32>
    %13 = vector.broadcast %12 : vector<1x128xf32> to vector<8x128xf32>
    %14 = arith.addf %11, %13 : vector<8x128xf32>
    %cst_7 = arith.constant 0.000000e+00 : f32
    %15 = vector.broadcast %cst_7 : f32 to vector<8x128xf32>
    %16 = arith.maximumf %14, %15 : vector<8x128xf32>
    %17 = arith.truncf %16 : vector<8x128xf32> to vector<8x128xbf16>
    %c0_8 = arith.constant 0 : index
    %c0_9 = arith.constant 0 : index
    %18 = vector.load %arg4[%c0_8, %c0_9] : memref<128x128xbf16, #tpu.memory_space<vmem>>, vector<128x128xbf16>
    %cst_10 = arith.constant dense<0.000000e+00> : vector<8x128xf32>
    %19 = tpu.matmul %17, %18, %cst_10 {dimension_numbers = #tpu.dot_dimension_numbers<[1], [0], [0], [1], [0, 0, 1, 1], [], []>} : vector<8x128xbf16>, vector<128x128xbf16>, vector<8x128xf32> -> vector<8x128xf32>
    %c0_11 = arith.constant 0 : index
    %c0_12 = arith.constant 0 : index
    %20 = vector.load %arg5[%c0_11, %c0_12] : memref<1x128xf32, #tpu.memory_space<vmem>>, vector<1x128xf32>
    %21 = vector.broadcast %20 : vector<1x128xf32> to vector<8x128xf32>
    %22 = arith.addf %19, %21 : vector<8x128xf32>
    %cst_13 = arith.constant dense<0xFF800000> : vector<8xf32>
    %23 = vector.multi_reduction <maximumf>, %22, %cst_13 [1] : vector<8x128xf32> to vector<8xf32>
    %24 = vector.shape_cast %23 : vector<8xf32> to vector<8x1xf32>
    %25 = vector.broadcast %24 : vector<8x1xf32> to vector<8x128xf32>
    %26 = arith.subf %22, %25 : vector<8x128xf32>
    %27 = math.exp %26 : vector<8x128xf32>
    %cst_14 = arith.constant dense<0.000000e+00> : vector<8xf32>
    %28 = vector.multi_reduction <add>, %27, %cst_14 [1] : vector<8x128xf32> to vector<8xf32>
    %29 = vector.shape_cast %28 : vector<8xf32> to vector<8x1xf32>
    %30 = vector.broadcast %29 : vector<8x1xf32> to vector<8x128xf32>
    %31 = arith.divf %27, %30 : vector<8x128xf32>
    %c0_15 = arith.constant 0 : index
    %c0_16 = arith.constant 0 : index
    %32 = vector.load %arg6[%c0_15, %c0_16] : memref<8x128xf32, #tpu.memory_space<vmem>>, vector<8x128xf32>
    tpu.vector_store %arg6[%c0_15, %c0_16], %31 {strides = array<i32>} : memref<8x128xf32, #tpu.memory_space<vmem>>, vector<8x128xf32>,
    return
  }
  func.func @transform_0(%arg0: i32) -> (i32, i32) {
    %c0_i32 = arith.constant 0 : i32
    %c0_i32_0 = arith.constant 0 : i32
    return %arg0, %c0_i32 : i32, i32
  }
  func.func @transform_1(%arg0: i32) -> (i32, i32) {
    %c0_i32 = arith.constant 0 : i32
    %c0_i32_0 = arith.constant 0 : i32
    %c0_i32_1 = arith.constant 0 : i32
    return %c0_i32, %c0_i32_0 : i32, i32
  }
  func.func @transform_2(%arg0: i32) -> (i32, i32) {
    %c0_i32 = arith.constant 0 : i32
    %c0_i32_0 = arith.constant 0 : i32
    %c0_i32_1 = arith.constant 0 : i32
    return %c0_i32, %c0_i32_0 : i32, i32
  }
  func.func @transform_3(%arg0: i32) -> (i32, i32) {
    %c0_i32 = arith.constant 0 : i32
    %c0_i32_0 = arith.constant 0 : i32
    %c0_i32_1 = arith.constant 0 : i32
    return %c0_i32, %c0_i32_0 : i32, i32
  }
  func.func @transform_4(%arg0: i32) -> (i32, i32) {
    %c0_i32 = arith.constant 0 : i32
    %c0_i32_0 = arith.constant 0 : i32
    %c0_i32_1 = arith.constant 0 : i32
    return %c0_i32, %c0_i32_0 : i32, i32
  }
  func.func @transform_5(%arg0: i32) -> (i32, i32) {
    %c0_i32 = arith.constant 0 : i32
    %c0_i32_0 = arith.constant 0 : i32
    return %arg0, %c0_i32 : i32, i32
  }
}

</mosaic_0001>

<bundles_post_ra>
// kernel: simple_policy_forward_batched.1
= control target key start
LH: loop header
LB: loop body
LE: loop exit
PB: predicated region body
PF: predicated region fallthrough
CT: control target
= control target key end

     0   :  { %10 = vsyncpa [#allocation3], 0  ;;  %s317_s18 = smov [#allocation2]   ;;  %s372_s0 = inlined_call_operand.vmem [shape: f32[8,8], index: 0, kind: input, shape index: {}]   ;;  %s373_s1 = inlined_call_operand.vmem [shape: bf16[8,128], index: 1, kind: input, shape index: {}]   ;;  %s374_s2 = inlined_call_operand.vmem [shape: f32[1,128], index: 2, kind: input, shape index: {}]   ;;  %s375_s3 = inlined_call_operand.hbm [shape: bf16[128,128], index: 3, kind: input, shape index: {}]   ;;  %s376_s4 = inlined_call_operand.vmem [shape: f32[1,128], index: 4, kind: input, shape index: {}]   ;;  %s377_s5 = inlined_call_operand.vmem [shape: f32[8,128], index: 5, kind: output, shape index: {}]  }
   0x1   :  { %s22_s19 = sshll.u32 %s317_s18, 4  ;;  %s23_s19 = int_to_ptr.vmem [resolvable:$true] %s22_s19 }
   0x2   :  { %s303_s20 = scalar_lea.vmem %s23_s19, 1024  ;;  %p308_p1 = scmp.lt.s32.totalorder %s23_s19, %s23_s19 }
   0x3   :  { %p304_p0 = scmp.ne.s32.totalorder %s23_s19, %s303_s20  ;;  %p309_p2 = scmp.lt.s32.totalorder %s303_s20, %s303_s20 }
   0x5   :  { %p310_p3 = por %p309_p2, %p308_p1 }
   0x7   :  { %p311_p4 = pnand %p310_p3, %p304_p0 }
   0x9   :  { %314 = shalt.err (!%p311_p4)
}
   0xa   :  { %s318_s21 = smov 64   ;;  %s319_s22 = smov 4  }
   0xb   :  { %28 = dma.hbm_to_vmem [thread:$0]  %s375_s3, 1024, %s23_s19, [#allocation3], %s318_s21, %s318_s21, %s319_s22  }
   0xc   :  { %315 = dma.done.wait [#allocation3], 1024  }
   0xd   :  { %316 = vsyncadd [#allocation3], 4294966272  ;;  %v35_v0 = vld [vmem:[%s372_s0] sm:$0xff]  ;;  %vm37_vm0 = vcmask 64512   ;;  %vm56_vm1 = vcmask 1043456   ;;  %v320_v4 = vmov 0.0  }
   0xe   :  { %v36_v1 = vmul.f32 %v35_v0, %v35_v0  ;;  %v45_v3 = vld [vmem:[%s373_s1] sm:$0xf]  ;;  %250 = vmatprep.subr.bf16.mxu0 %v320_v4  ;;  %vm321_vm2 = vmmov 0   ;;  %256 = vmatprep.subr.bf16.mxu1 %v320_v4  ;;  %v281_v6 = vld [vmem:[#allocation2 + $0x38] sm:$0xff]   ;;  %v282_v7 = vld [vmem:[#allocation2 + $0x30] sm:$0xff]  }
   0xf   :  { %v58_v5 = vsel %vm56_vm1, %v45_v3, 0  ;;  %252 = vmatprep.mubr.msk.bf16.mxu0 %vm321_vm2, %v320_v4  ;;  %272 = vmatprep.mubr.msk.bf16.mxu1 %vm321_vm2, %v320_v4  ;;  %v283_v8 = vld [vmem:[#allocation2 + $0x28] sm:$0xff]   ;;  %v284_v9 = vld [vmem:[#allocation2 + $0x20] sm:$0xff]   ;;  %v285_v10 = vld [vmem:[#allocation2 + $0x18] sm:$0xff]  }
  0x10   :  { %v38_v2 = vsel %vm37_vm0, %v36_v1, 0.0  ;;  %251 = vmatpush3.bf16.msra.mxu0 %v58_v5  ;;  %257 = vmatpush3.bf16.msra.mxu1 %v281_v6  ;;  %v286_v11 = vld [vmem:[#allocation2 + $0x10] sm:$0xff]   ;;  %v287_v17 = vld [vmem:[#allocation2 + $0x8] sm:$0xff]   ;;  %v288_v18 = vld [vmem:[#allocation2] sm:$0xff]  }
  0x11   :  { %39 = vadd.xlane.f32.xlu0 %v38_v2  ;;  %258 = vmatprep.subr.bf16.mxu1 %v320_v4  ;;  %v228_v19 = vld [vmem:[%s374_s2] ss:$0 sm:$0xff] }
  0x12   :  { %v230_v27 = vld [vmem:[%s376_s4] ss:$0 sm:$0xff] }
  0x14   :  { %259 = vmatpush3.bf16.msra.mxu1 %v282_v7 }
  0x15   :  { %260 = vmatprep.subr.bf16.mxu1 %v320_v4 }
  0x18   :  { %261 = vmatpush3.bf16.msra.mxu1 %v283_v8 }
  0x19   :  { %262 = vmatprep.subr.bf16.mxu1 %v320_v4 }
  0x1c   :  { %263 = vmatpush3.bf16.msra.mxu1 %v284_v9 }
  0x1d   :  { %264 = vmatprep.subr.bf16.mxu1 %v320_v4 }
  0x20   :  { %265 = vmatpush3.bf16.msra.mxu1 %v285_v10 }
  0x21   :  { %266 = vmatprep.subr.bf16.mxu1 %v320_v4 }
  0x24   :  { %267 = vmatpush3.bf16.msra.mxu1 %v286_v11 }
  0x25   :  { %268 = vmatprep.subr.bf16.mxu1 %v320_v4 }
  0x28   :  { %269 = vmatpush3.bf16.msra.mxu1 %v287_v17 }
  0x29   :  { %270 = vmatprep.subr.bf16.mxu1 %v320_v4 }
  0x2c   :  { %271 = vmatpush3.bf16.msra.mxu1 %v288_v18 }
  0x9a   :  { %v40_v12 = vpop.xlane.xlu0 %39 }
  0x9b   :  { %v41_v13 = vmax.f32 %v40_v12, 1e-24 }
  0x9d   :  { %289 = vrsqrt.f32 %v41_v13 }
  0xaa   :  { %v290_v14 = vpop.eup %289 }
  0xab   :  { %v43_v15 = vmul.f32 %v290_v14, %v35_v0 }
  0xad   :  { %v44_v16 = vpack.c.bf16 %v43_v15, %v43_v15 }
  0xaf   :  { %253 = vmatmul.mubr.msk.bf16.vlgmr.msra.gmra.mxu0 %vm37_vm0, %v44_v16 }
 0x16f   :  { %v94_v20 = vpop.f32.mrf.mxu0 }
 0x170   :  { %v95_v21 = vadd.f32 %v228_v19, %v94_v20 }
 0x171   :  { %v254_v22 = vpop.f32.mrf.mxu0 }
 0x172   :  { %v100_v23 = vmax.f32 %v95_v21, 0.0 }
 0x173   :  { %v97_v24 = vpop.f32.mrf.mxu0 }
 0x174   :  { %v101_v25 = vpack.c.bf16 %v100_v23, %v100_v23 }
 0x175   :  { %v255_v26 = vpop.f32.mrf.mxu0 }
 0x176   :  { %273 = vmatmul.mubr.bf16.vlgmr.msra.gmra.mxu1 %v101_v25 }
 0x236   :  { %v207_v28 = vpop.f32.mrf.mxu1 }
 0x237   :  { %v208_v29 = vadd.f32 %v230_v27, %v207_v28 }
 0x238   :  { %v274_v30 = vpop.f32.mrf.mxu1 }
 0x239   :  { %213 = vmax.xlane.f32.xlu0 %v208_v29 }
 0x23a   :  { %v210_v31 = vpop.f32.mrf.mxu1 }
 0x23c   :  { %v275_v32 = vpop.f32.mrf.mxu1 }
 0x2c2   :  { %v214_v33 = vpop.xlane.xlu0 %213 }
 0x2c3   :  { %v215_v34 = vsub.f32 %v208_v29, %v214_v33 }
 0x2c5   :  { %v216_v35 = vmul.f32 1.442695, %v215_v34 }
 0x2c7   :  { %291 = vpow2.f32 %v216_v35 }
 0x2d4   :  { %v292_v36 = vpop.eup %291 }
 0x2d5   :  { %218 = vadd.xlane.f32.xlu1 %v292_v36 }
 0x35e   :  { %v219_v37 = vpop.xlane.xlu1 %218 }
 0x35f   :  { %293 = vrcp.f32 %v219_v37 }
 0x36c   :  { %v294_v38 = vpop.eup %293 }
 0x36d   :  { %v221_v39 = vmul.f32 %v294_v38, %v292_v36 }
 0x36f   :  { %222 = vst [vmem:[%s377_s5] sm:$0xff] %v221_v39 }
 0x370   :  { %227 = vsyncpa [#allocation3], 1 }

</bundles_post_ra>
